<compile_context>
chip_gen: v7x
topology: tpu7x:2x2x1
jax: 0.10.0
libtpu: 0.0.40
codegen_flags: <defaults>
</compile_context>

<pallas_src>
import numpy as np
import jax
import jax.numpy as jnp
from jax import lax
from jax.experimental import pallas as pl
from jax.experimental.pallas import tpu as pltpu


def _round_up(a, b):
    return (a + b - 1) // b * b


def _cdiv(a, b):
    return (a + b - 1) // b


# --------------------------------------------------------------------------------------
# Pass 1: streaming statistics (per-partial sum(x) and x^T x) over lane-packed row tiles.
# --------------------------------------------------------------------------------------
def _make_stats_kernel(tile_m, cp, np_rows, n_half):
    def kernel(x_ref, gram_ref, sum_ref):
        part = pl.program_id(0)     # partial accumulator ("parallel" -> megacore on v7x)
        j = pl.program_id(1)        # m-tile index within this partial ("arbitrary")

        @pl.when(j == 0)
        def _():
            gram_ref[...] = jnp.zeros_like(gram_ref)
            sum_ref[...] = jnp.zeros_like(sum_ref)

        # Row mask: logical tile index may point past the (ragged / padded) sample axis;
        # those rows contribute exactly zero (jnp.where also neutralizes OOB garbage).
        rows_left = np_rows - (part * n_half + j) * tile_m
        row_id = lax.broadcasted_iota(jnp.int32, (tile_m, cp), 0)
        xt = x_ref[...].astype(jnp.float32)
        xt = jnp.where(row_id < rows_left, xt, 0.0)

        # x^T x without materializing a transpose: contract the row axis of both operands.
        gram_ref[...] += lax.dot_general(
            xt, xt, (((0,), (0,)), ((), ())),
            preferred_element_type=jnp.float32)
        sum_ref[...] += jnp.sum(xt, axis=0, keepdims=True)

    return kernel


# --------------------------------------------------------------------------------------
# Pass 2: xn = (x - mean) @ wmw + bias, streamed over lane-packed row tiles.
# --------------------------------------------------------------------------------------
def _apply_kernel(x_ref, mean_ref, wmw_ref, b_ref, o_ref):
    xc = x_ref[...].astype(jnp.float32) - mean_ref[...]            # (tile_m, Cp)
    xn = jnp.dot(xc, wmw_ref[...], preferred_element_type=jnp.float32)
    o_ref[...] = (xn + b_ref[...]).astype(o_ref.dtype)


# --------------------------------------------------------------------------------------
# Finalize glue (tiny (g, nc, nc) work between the two streaming passes).
# --------------------------------------------------------------------------------------
def _finalize(gram_parts, sum_parts, w_row, n_samples, C, nc, k, T, eps):
    g = C // nc
    gram = jnp.sum(gram_parts, axis=0)                 # (Cp, Cp)
    ssum = jnp.sum(sum_parts, axis=0)[0]               # (Cp,)
    if k > 1:
        di = jnp.arange(k)
        # diagonal (C, C) slab blocks of the packed Gram sum to the full Gram
        gram = gram.reshape(k, C, k, C)[di, :, di, :].sum(0)
        ssum = ssum.reshape(k, C).sum(0)

    mean = ssum / n_samples                            # (C,)
    sigma_full = gram / n_samples - mean[:, None] * mean[None, :]

    gi = jnp.arange(g)
    sigma = sigma_full.reshape(g, nc, g, nc)[gi, :, gi, :]          # (g, nc, nc)
    eye = jnp.eye(nc, dtype=jnp.float32)
    sigma = sigma + eps * eye

    rTr = 1.0 / jnp.trace(sigma, axis1=1, axis2=2)[:, None, None]
    sigma_n = sigma * rTr
    P = jnp.broadcast_to(eye, (g, nc, nc))
    for _ in range(T):
        P3 = P @ P @ P
        P = 1.5 * P - 0.5 * (P3 @ sigma_n)
    wm = P * jnp.sqrt(rTr)                                          # (g, nc, nc)

    # (C, C) block-diagonal whitening matrix; wm is symmetric, so folding the affine
    # weight over the *columns* yields the already-transposed RHS for xc @ wmw.
    wm_full = (jnp.eye(g, dtype=jnp.float32)[:, None, :, None]
               * wm[:, :, None, :]).reshape(C, C)
    wmw_t = wm_full * w_row                                         # (C, C)

    if k > 1:   # lane-packed k-times block-diagonal copy + tiled mean
        wmw_packed = jnp.kron(jnp.eye(k, dtype=jnp.float32), wmw_t)
        mean_packed = jnp.tile(mean, k).reshape(1, k * C)
    else:
        wmw_packed = wmw_t
        mean_packed = mean.reshape(1, C)
    return mean, wm, mean_packed, wmw_packed


# --------------------------------------------------------------------------------------
# Wrapper.
# --------------------------------------------------------------------------------------
def iternorm_forward(X, weight, bias, running_mean, running_wm,
                     num_channels, T=5, eps=1e-5, momentum=0.1,
                     tile_bytes=None, vmem_limit_bytes=None):
    """Training-mode IterNorm forward. X: (N, C). Returns (Xn, new_rm, new_rwm)."""
    N, C = X.shape
    nc = num_channels
    assert C % nc == 0, "num_features must be divisible by num_channels"
    g = C // nc

    # ---- generation-aware budgets (v5e/v6e: 128 MiB VMEM, v7x: 64 MiB) ----------------
    try:
        vmem_cap = int(pltpu.get_tpu_info().vmem_capacity_bytes)
    except Exception:
        vmem_cap = 64 * 1024 * 1024
    if vmem_limit_bytes is None:
        vmem_limit_bytes = max(32 * 1024 * 1024,
                               min((vmem_cap * 3) // 4, 96 * 1024 * 1024))
    if tile_bytes is None:
        tile_bytes = 4 * 1024 * 1024 if vmem_cap >= 100 * 1024 * 1024 else 2 * 1024 * 1024

    # ---- lane packing: view (N, C) as (N/k, k*C) so loads/stores are 128-lane dense ---
    k = 1
    if C < 128 and 128 % C == 0:
        k = 128 // C
        while k > 1 and N % k != 0:
            k //= 2
    cp = k * C
    np_rows = N // k

    xp = X.reshape(np_rows, cp)                 # free row-major reshape (no copy)
    itemsize = np.dtype(X.dtype).itemsize
    row_align = 8 if itemsize >= 4 else (16 if itemsize == 2 else 32)
    max_rows = max(row_align,
                   (tile_bytes // (cp * itemsize)) // row_align * row_align)
    tile_m = min(_round_up(np_rows, row_align), max_rows)
    n_tiles = _cdiv(np_rows, tile_m)

    # split the stats pass into partial accumulators (feeds both cores on v7x)
    n_parts = 2 if n_tiles >= 2 else 1
    n_half = _cdiv(n_tiles, n_parts)

    # ---- pass 1: streaming sum(x) and x^T x --------------------------------------------
    stats_kernel = _make_stats_kernel(tile_m, cp, np_rows, n_half)
    gram_parts, sum_parts = pl.pallas_call(
        stats_kernel,
        out_shape=(
            jax.ShapeDtypeStruct((n_parts, cp, cp), jnp.float32),
            jax.ShapeDtypeStruct((n_parts, 1, cp), jnp.float32),
        ),
        grid_spec=pltpu.PrefetchScalarGridSpec(
            num_scalar_prefetch=0,
            grid=(n_parts, n_half),
            in_specs=[
                # clamp so padded logical tiles never issue an out-of-range DMA;
                # the in-kernel row mask zeroes their contribution.
                pl.BlockSpec(
                    (tile_m, cp),
                    lambda p, j: (jnp.minimum(p * n_half + j, n_tiles - 1), 0)),
            ],
            out_specs=[
                pl.BlockSpec((None, cp, cp), lambda p, j: (p, 0, 0)),
                pl.BlockSpec((None, 1, cp), lambda p, j: (p, 0, 0)),
            ],
        ),
        compiler_params=pltpu.CompilerParams(
            dimension_semantics=("parallel", "arbitrary"),
            vmem_limit_bytes=vmem_limit_bytes),
    )(xp)

    # ---- finalize: mean / Sigma / Newton-Schulz / packed whitening matrix (tiny) -------
    w_row = weight.reshape(1, C).astype(jnp.float32)
    b_row = bias.reshape(1, C).astype(jnp.float32)
    mean, wm, mean_packed, wmw_packed = _finalize(
        gram_parts, sum_parts, w_row, float(N), C, nc, k, T, eps)
    bias_packed = jnp.tile(b_row, (1, k))

    # ---- pass 2: whitening matmul, written straight back in the packed (N/k, kC) view --
    out_p = pl.pallas_call(
        _apply_kernel,
        out_shape=jax.ShapeDtypeStruct((np_rows, cp), X.dtype),
        grid_spec=pltpu.PrefetchScalarGridSpec(
            num_scalar_prefetch=0,
            grid=(n_tiles,),
            in_specs=[
                pl.BlockSpec((tile_m, cp), lambda i: (i, 0)),
                pl.BlockSpec((1, cp), lambda i: (0, 0)),
                pl.BlockSpec((cp, cp), lambda i: (0, 0)),
                pl.BlockSpec((1, cp), lambda i: (0, 0)),
            ],
            out_specs=pl.BlockSpec((tile_m, cp), lambda i: (i, 0)),
        ),
        compiler_params=pltpu.CompilerParams(
            dimension_semantics=("parallel",),
            vmem_limit_bytes=vmem_limit_bytes),
    )(xp, mean_packed, wmw_packed, bias_packed)

    Xn = out_p.reshape(N, C)                    # free reshape back to (N, C)

    # running-buffer EMA updates (tiny glue)
    new_running_mean = momentum * mean.reshape(g, nc, 1) + (1.0 - momentum) * running_mean
    new_running_wm = momentum * wm + (1.0 - momentum) * running_wm
    return Xn, new_running_mean, new_running_wm


def iternorm_reference(X, weight, bias, nc, T=5, eps=1e-5):
    """Pure-JAX per-group reference mirroring the PyTorch training forward."""
    N, C = X.shape
    g = C // nc
    x = jnp.transpose(X).reshape(g, nc, N)
    mean = x.mean(-1, keepdims=True)
    xc = x - mean
    I = jnp.broadcast_to(jnp.eye(nc, dtype=jnp.float32), (g, nc, nc))
    sigma = eps * I + jnp.einsum('gim,gjm->gij', xc, xc) / N
    rTr = 1.0 / jnp.trace(sigma, axis1=1, axis2=2)[:, None, None]
    sigma_n = sigma * rTr
    P = I
    for _ in range(T):
        P3 = P @ P @ P
        P = 1.5 * P - 0.5 * (P3 @ sigma_n)
    wm = P * jnp.sqrt(rTr)
    xn = wm @ xc
    Xn = jnp.transpose(xn.reshape(C, N))
    return Xn * weight + bias, mean, wm


if __name__ == "__main__":
    # keep the pure-JAX reference (and the tiny finalize glue) at full f32 matmul precision
    jax.config.update("jax_default_matmul_precision", "highest")

    # IterNorm(num_features=32, num_groups=8, dim=2) -> nc = 4, g = 8
    num_features = 32
    num_groups = 8
    num_channels = (num_features - 1) // num_groups + 1   # 4
    num_groups = num_features // num_channels              # 8
    T, eps, momentum = 5, 1e-5, 0.1
    batch = 16

    key = jax.random.PRNGKey(0)
    kx, kw, kb = jax.random.split(key, 3)
    X = jax.random.normal(kx, (batch, num_features), dtype=jnp.float32)
    # non-trivial affine params to exercise the weight-folding path
    weight = 1.0 + 0.1 * jax.random.normal(kw, (1, num_features), dtype=jnp.float32)
    bias = 0.1 * jax.random.normal(kb, (1, num_features), dtype=jnp.float32)
    running_mean = jnp.zeros((num_groups, num_channels, 1), dtype=jnp.float32)
    running_wm = jnp.broadcast_to(
        jnp.eye(num_channels, dtype=jnp.float32),
        (num_groups, num_channels, num_channels))

    Xn, new_rm, new_rwm = iternorm_forward(
        X, weight, bias, running_mean, running_wm,
        num_channels, T=T, eps=eps, momentum=momentum)
    jax.block_until_ready((Xn, new_rm, new_rwm))

    # sanity check vs pure-JAX per-group reference
    Xn_ref, mean_ref, wm_ref = iternorm_reference(
        X, weight, bias, num_channels, T=T, eps=eps)
    np.testing.assert_allclose(np.asarray(Xn), np.asarray(Xn_ref),
                               rtol=1e-4, atol=1e-4)
    np.testing.assert_allclose(
        np.asarray(new_rm),
        np.asarray(momentum * mean_ref + (1 - momentum) * running_mean),
        rtol=1e-4, atol=1e-4)
    np.testing.assert_allclose(
        np.asarray(new_rwm),
        np.asarray(momentum * wm_ref + (1 - momentum) * running_wm),
        rtol=1e-4, atol=1e-4)

    print("KERNEL_OK")
</pallas_src>

<mosaic_0001>
module attributes {stable_mosaic.version = 11 : i64} {
  func.func @kernel(%arg0: i32, %arg1: i32, %arg2: memref<8x128xf32, #tpu.memory_space<vmem>>, %arg3: memref<1x128x128xf32, #tpu.memory_space<vmem>>, %arg4: memref<1x1x128xf32, #tpu.memory_space<vmem>>) attributes {dimension_semantics = [#tpu.dimension_semantics<parallel>, #tpu.dimension_semantics<arbitrary>], iteration_bounds = array<i64: 1, 1>, scalar_prefetch = 0 : i64, scratch_operands = 0 : i64, tpu.core_type = #tpu.core_type<tc>, window_params = [{transform_indices = @transform_0, window_bounds = array<i64: 8, 128>}, {transform_indices = @transform_1, window_bounds = array<i64: 1, 128, 128>}, {transform_indices = @transform_2, window_bounds = array<i64: 1, 1, 128>}]} {
    %c0_i32 = arith.constant 0 : i32
    %0 = arith.cmpi eq, %arg1, %c0_i32 : i32
    %1 = arith.extui %0 : i1 to i32
    %c0_i32_0 = arith.constant 0 : i32
    %2 = arith.cmpi ne, %1, %c0_i32_0 : i32
    scf.if %2 {
      %cst_16 = arith.constant 0.000000e+00 : f32
      %28 = vector.broadcast %cst_16 : f32 to vector<128x128xf32>
      %c0_17 = arith.constant 0 : index
      %c0_18 = arith.constant 0 : index
      %c0_19 = arith.constant 0 : index
      %29 = vector.load %arg3[%c0_17, %c0_18, %c0_19] : memref<1x128x128xf32, #tpu.memory_space<vmem>>, vector<1x128x128xf32>
      %30 = vector.shape_cast %29 : vector<1x128x128xf32> to vector<128x128xf32>
      %31 = vector.shape_cast %28 : vector<128x128xf32> to vector<1x128x128xf32>
      tpu.vector_store %arg3[%c0_17, %c0_18, %c0_19], %31 {strides = array<i32>} : memref<1x128x128xf32, #tpu.memory_space<vmem>>, vector<1x128x128xf32>,
      %cst_20 = arith.constant 0.000000e+00 : f32
      %32 = vector.broadcast %cst_20 : f32 to vector<1x128xf32>
      %c0_21 = arith.constant 0 : index
      %c0_22 = arith.constant 0 : index
      %c0_23 = arith.constant 0 : index
      %33 = vector.load %arg4[%c0_21, %c0_22, %c0_23] : memref<1x1x128xf32, #tpu.memory_space<vmem>>, vector<1x1x128xf32>
      %34 = vector.shape_cast %33 : vector<1x1x128xf32> to vector<1x128xf32>
      %35 = vector.shape_cast %32 : vector<1x128xf32> to vector<1x1x128xf32>
      tpu.vector_store %arg4[%c0_21, %c0_22, %c0_23], %35 {strides = array<i32>} : memref<1x1x128xf32, #tpu.memory_space<vmem>>, vector<1x1x128xf32>,
    } else {
    }
    %c1_i32 = arith.constant 1 : i32
    %3 = arith.muli %arg0, %c1_i32 : i32
    %4 = arith.addi %3, %arg1 : i32
    %c8_i32 = arith.constant 8 : i32
    %5 = arith.muli %4, %c8_i32 : i32
    %c4_i32 = arith.constant 4 : i32
    %6 = arith.subi %c4_i32, %5 : i32
    %7 = tpu.iota {dimensions = array<i32: 0>} : vector<8x128xi32>
    %c0 = arith.constant 0 : index
    %c0_1 = arith.constant 0 : index
    %8 = vector.load %arg2[%c0, %c0_1] : memref<8x128xf32, #tpu.memory_space<vmem>>, vector<8x128xf32>
    %9 = vector.broadcast %6 : i32 to vector<8x128xi32>
    %10 = arith.cmpi slt, %7, %9 : vector<8x128xi32>
    %cst = arith.constant 0.000000e+00 : f32
    %11 = vector.broadcast %cst : f32 to vector<8x128xf32>
    %12 = arith.select %10, %8, %11 : vector<8x128xi1>, vector<8x128xf32>
    %c0_2 = arith.constant 0 : index
    %c0_3 = arith.constant 0 : index
    %c0_4 = arith.constant 0 : index
    %13 = vector.load %arg3[%c0_2, %c0_3, %c0_4] : memref<1x128x128xf32, #tpu.memory_space<vmem>>, vector<1x128x128xf32>
    %14 = vector.shape_cast %13 : vector<1x128x128xf32> to vector<128x128xf32>
    %cst_5 = arith.constant dense<0.000000e+00> : vector<128x128xf32>
    %15 = tpu.matmul %12, %12, %cst_5 {dimension_numbers = #tpu.dot_dimension_numbers<[0], [0], [1], [1], [0, 1, 1, 1], [], []>, precision = #tpu.contract_precision<fp32>} : vector<8x128xf32>, vector<8x128xf32>, vector<128x128xf32> -> vector<128x128xf32>
    %16 = arith.addf %14, %15 : vector<128x128xf32>
    %c0_6 = arith.constant 0 : index
    %c0_7 = arith.constant 0 : index
    %c0_8 = arith.constant 0 : index
    %17 = vector.load %arg3[%c0_6, %c0_7, %c0_8] : memref<1x128x128xf32, #tpu.memory_space<vmem>>, vector<1x128x128xf32>
    %18 = vector.shape_cast %17 : vector<1x128x128xf32> to vector<128x128xf32>
    %19 = vector.shape_cast %16 : vector<128x128xf32> to vector<1x128x128xf32>
    tpu.vector_store %arg3[%c0_6, %c0_7, %c0_8], %19 {strides = array<i32>} : memref<1x128x128xf32, #tpu.memory_space<vmem>>, vector<1x128x128xf32>,
    %c0_9 = arith.constant 0 : index
    %c0_10 = arith.constant 0 : index
    %c0_11 = arith.constant 0 : index
    %20 = vector.load %arg4[%c0_9, %c0_10, %c0_11] : memref<1x1x128xf32, #tpu.memory_space<vmem>>, vector<1x1x128xf32>
    %21 = vector.shape_cast %20 : vector<1x1x128xf32> to vector<1x128xf32>
    %cst_12 = arith.constant dense<0.000000e+00> : vector<128xf32>
    %22 = vector.multi_reduction <add>, %12, %cst_12 [0] : vector<8x128xf32> to vector<128xf32>
    %23 = vector.shape_cast %22 : vector<128xf32> to vector<1x128xf32>
    %24 = arith.addf %21, %23 : vector<1x128xf32>
    %c0_13 = arith.constant 0 : index
    %c0_14 = arith.constant 0 : index
    %c0_15 = arith.constant 0 : index
    %25 = vector.load %arg4[%c0_13, %c0_14, %c0_15] : memref<1x1x128xf32, #tpu.memory_space<vmem>>, vector<1x1x128xf32>
    %26 = vector.shape_cast %25 : vector<1x1x128xf32> to vector<1x128xf32>
    %27 = vector.shape_cast %24 : vector<1x128xf32> to vector<1x1x128xf32>
    tpu.vector_store %arg4[%c0_13, %c0_14, %c0_15], %27 {strides = array<i32>} : memref<1x1x128xf32, #tpu.memory_space<vmem>>, vector<1x1x128xf32>,
    return
  }
  func.func @transform_0(%arg0: i32, %arg1: i32) -> (i32, i32) {
    %c1_i32 = arith.constant 1 : i32
    %0 = arith.muli %arg0, %c1_i32 : i32
    %1 = arith.addi %0, %arg1 : i32
    %c0_i32 = arith.constant 0 : i32
    %2 = arith.minsi %1, %c0_i32 : i32
    %c0_i32_0 = arith.constant 0 : i32
    %c0_i32_1 = arith.constant 0 : i32
    return %2, %c0_i32_0 : i32, i32
  }
  func.func @transform_1(%arg0: i32, %arg1: i32) -> (i32, i32, i32) {
    %c0_i32 = arith.constant 0 : i32
    %c0_i32_0 = arith.constant 0 : i32
    %c0_i32_1 = arith.constant 0 : i32
    return %arg0, %c0_i32, %c0_i32_0 : i32, i32, i32
  }
  func.func @transform_2(%arg0: i32, %arg1: i32) -> (i32, i32, i32) {
    %c0_i32 = arith.constant 0 : i32
    %c0_i32_0 = arith.constant 0 : i32
    %c0_i32_1 = arith.constant 0 : i32
    return %arg0, %c0_i32, %c0_i32_0 : i32, i32, i32
  }
}

</mosaic_0001>

<bundles_post_ra>
// kernel: tpu_custom_call.1
= control target key start
LH: loop header
LB: loop body
LE: loop exit
PB: predicated region body
PF: predicated region fallthrough
CT: control target
= control target key end

     0   :  { %8 = vsyncpa [#allocation3], 0  ;;  %s2026_s0 = inlined_call_operand.hbm [shape: f32[4,128], index: 0, kind: input, shape index: {}]   ;;  %s2027_s1 = inlined_call_operand.hbm [shape: f32[1,128,128], index: 1, kind: output, shape index: {0}]   ;;  %s2028_s2 = inlined_call_operand.hbm [shape: f32[1,1,128], index: 2, kind: output, shape index: {1}]  }
   0x1   :  { %9 = vsyncpa [#allocation4], 0 }
   0x2   :  { %10 = vsyncpa [#allocation7], 0 }
   0x3   :  { %21 = vsyncadd [#allocation3], 64  ;;  %s1753_s9 = smov [#allocation2]   ;;  %s1681_s13 = scalar_lea.hbm %s2026_s0, 64 }
   0x4   :  { %s26_s10 = sshll.u32 %s1753_s9, 4  ;;  %p1682_p0 = scmp.ne.s32.totalorder %s2026_s0, %s1681_s13  ;;  %s27_s10 = int_to_ptr.vmem [resolvable:$true] %s26_s10 }
   0x5   :  { %p1685_p1 = scmp.lt.u32.totalorder %s1681_s13, %s2026_s0 }
   0x7   :  { %p1687_p2 = pnand %p1685_p1, %p1682_p0 }
   0x9   :  { %1690 = shalt.err (!%p1687_p2)
}
   0xa   :  { %s1691_s18 = scalar_lea.vmem %s27_s10, 64  ;;  %s1695_s19 = scalar_lea.vmem %s27_s10, 128 }
   0xb   :  { %p1692_p3 = scmp.ne.s32.totalorder %s27_s10, %s1691_s18  ;;  %p1696_p4 = scmp.lt.s32.totalorder %s27_s10, %s27_s10 }
   0xc   :  { %p1697_p5 = scmp.lt.s32.totalorder %s1695_s19, %s1691_s18 }
   0xe   :  { %p1698_p6 = por %p1697_p5, %p1696_p4 }
  0x10   :  { %p1699_p7 = pnand %p1698_p6, %p1692_p3 }
  0x12   :  { %1702 = shalt.err (!%p1699_p7)
}
  0x13   :  { %s1754_s20 = smov 64   ;;  %s1755_s21 = smov 4  }
  0x14   :  { %32 = dma.hbm_to_vmem [thread:$0]  %s2026_s0, 64, %s27_s10, [#allocation3], %s1754_s20, %s1754_s20, %s1755_s21  }
  0x15   :  { %1747 = dma.done.wait [#allocation3], 128  }
  0x16   :  { %1748 = vsyncadd [#allocation3], 4294967168  ;;  %v1788_v0 = vld [vmem:[#allocation2] sm:$0xf]  ;;  %vm120_vm0 = vcmask 64512   ;;  %s1757_s0 = smov [#allocation6]  }
  0x17   :  { %88 = vxpose.xlu0.b32.start.end [1/1] (short) %v1788_v0, 128  ;;  %v1792_v1 = vand.u32 4294901760, %v1788_v0  ;;  %s1319_s24 = sshll.u32 %s1757_s0, 4  ;;  %s1320_s24 = int_to_ptr.vmem [resolvable:$true] %s1319_s24 }
  0x18   :  { %s1703_s25 = scalar_lea.vmem %s1320_s24, 16  ;;  %s1707_s26 = scalar_lea.vmem %s1320_s24, 32 }
  0x19   :  { %1515 = vmatprep.subr.mxu0 %v1792_v1  ;;  %1437 = vmatprep.subr.mxu1 %v1792_v1  ;;  %v1800_v2 = vsub.f32 %v1788_v0, %v1792_v1  ;;  %p1704_p8 = scmp.ne.s32.totalorder %s1320_s24, %s1703_s25  ;;  %p1708_p9 = scmp.lt.s32.totalorder %s1320_s24, %s1320_s24 }
  0x1a   :  { %1516 = vmatpush3.msra.mxu0 %v1792_v1  ;;  %1438 = vmatpush3.msra.mxu1 %v1792_v1  ;;  %p1709_p10 = scmp.lt.s32.totalorder %s1707_s26, %s1703_s25 }
  0x1b   :  { %v398_v3 = vand.u32 4294901760, %v1800_v2 }
  0x1c   :  { %p1710_p11 = por %p1709_p10, %p1708_p9 }
  0x1d   :  { %v399_v4 = vsub.f32 %v1800_v2, %v398_v3  ;;  %1541 = vmatprep.subr.mxu0 %v398_v3 }
  0x1e   :  { %p1711_p12 = pnand %p1710_p11, %p1704_p8 }
  0x1f   :  { %v400_v5 = vand.u32 4294901760, %v399_v4 }
  0x21   :  { %1463 = vmatprep.subr.mxu1 %v400_v5 }
  0x97   :  { %v104_v6 = vpop.trf.xlu0 }
  0x98   :  { %v122_v7 = vsel %vm120_vm0, %v104_v6, 0 }
  0x99   :  { %v1805_v8 = vand.u32 4294901760, %v122_v7 }
  0x9b   :  { %v1808_v9 = vsub.f32 %v122_v7, %v1805_v8  ;;  %v105_v10 = vpop.trf.xlu0 }
  0x9c   :  { %v125_v11 = vsel %vm120_vm0, %v105_v10, 0 }
  0x9d   :  { %v1811_v12 = vand.u32 4294901760, %v125_v11  ;;  %v237_v13 = vand.u32 4294901760, %v1808_v9 }
  0x9f   :  { %v1815_v14 = vsub.f32 %v125_v11, %v1811_v12  ;;  %1517 = vmatprep.mubr.f32.mxu0 %v237_v13  ;;  %v106_v15 = vpop.trf.xlu0  ;;  %v238_v16 = vsub.f32 %v1808_v9, %v237_v13 }
  0xa0   :  { %v128_v17 = vsel %vm120_vm0, %v106_v15, 0 }
  0xa1   :  { %v1819_v18 = vand.u32 4294901760, %v128_v17  ;;  %v239_v19 = vand.u32 4294901760, %v238_v16  ;;  %v247_v20 = vand.u32 4294901760, %v1815_v14 }
  0xa3   :  { %v1823_v21 = vsub.f32 %v128_v17, %v1819_v18  ;;  %1439 = vmatprep.mubr.f32.mxu1 %v239_v19  ;;  %v107_v22 = vpop.trf.xlu0  ;;  %1518 = vmatmul.mubr.f32.vlgmr.msra.gmra.mrb[0].mxu0 %v247_v20  ;;  %v248_v23 = vsub.f32 %v1815_v14, %v247_v20 }
  0xa4   :  { %v131_v24 = vsel %vm120_vm0, %v107_v22, 0  ;;  %1542 = vmatpush3.msra.mxu0 %v398_v3 }
  0xa5   :  { %v1827_v25 = vand.u32 4294901760, %v131_v24  ;;  %v249_v26 = vand.u32 4294901760, %v248_v23  ;;  %v257_v27 = vand.u32 4294901760, %v1823_v21  ;;  %1567 = vmatprep.subr.mxu0 %v1792_v1 }
  0xa7   :  { %v1832_v28 = vsub.f32 %v131_v24, %v1827_v25  ;;  %v108_v29 = vpop.trf.xlu0  ;;  %1440 = vmatmul.mubr.f32.vlgmr.msra.gmra.mrb[0].mxu1 %v249_v26  ;;  %1520 = vmatprep.mubr.f32.mxu0 %v257_v27  ;;  %v258_v30 = vsub.f32 %v1823_v21, %v257_v27 }
  0xa8   :  { %v134_v31 = vsel %vm120_vm0, %v108_v29, 0  ;;  %1464 = vmatpush3.msra.mxu1 %v400_v5 }
  0xa9   :  { %v1836_v32 = vand.u32 4294901760, %v134_v31  ;;  %v259_v33 = vand.u32 4294901760, %v258_v30  ;;  %v267_v34 = vand.u32 4294901760, %v1832_v28  ;;  %1489 = vmatprep.subr.mxu1 %v1800_v2 }
  0xab   :  { %v1841_v35 = vsub.f32 %v134_v31, %v1836_v32  ;;  %v109_v36 = vpop.trf.xlu0  ;;  %1442 = vmatprep.mubr.f32.mxu1 %v259_v33  ;;  %1521 = vmatmul.mubr.f32.gmra.mrb[2].mxu0 %v267_v34  ;;  %v268_v37 = vsub.f32 %v1832_v28, %v267_v34 }
  0xac   :  { %v137_v38 = vsel %vm120_vm0, %v109_v36, 0 }
  0xad   :  { %v1845_v39 = vand.u32 4294901760, %v137_v38  ;;  %v269_v40 = vand.u32 4294901760, %v268_v37  ;;  %v277_v41 = vand.u32 4294901760, %v1841_v35 }
  0xaf   :  { %v1849_v42 = vsub.f32 %v137_v38, %v1845_v39  ;;  %v110_v43 = vpop.trf.xlu0  ;;  %1443 = vmatmul.mubr.f32.gmra.mrb[2].mxu1 %v269_v40  ;;  %1523 = vmatprep.mubr.f32.mxu0 %v277_v41  ;;  %v278_v44 = vsub.f32 %v1841_v35, %v277_v41 }
  0xb0   :  { %v140_v45 = vsel %vm120_vm0, %v110_v43, 0 }
  0xb1   :  { %v1853_v46 = vand.u32 4294901760, %v140_v45  ;;  %v279_v47 = vand.u32 4294901760, %v278_v44  ;;  %v287_v48 = vand.u32 4294901760, %v1849_v42 }
  0xb3   :  { %v1857_v49 = vsub.f32 %v140_v45, %v1853_v46  ;;  %v111_v50 = vpop.trf.xlu0  ;;  %1445 = vmatprep.mubr.f32.mxu1 %v279_v47  ;;  %1524 = vmatmul.mubr.f32.gmra.mrb[4].mxu0 %v287_v48  ;;  %v288_v51 = vsub.f32 %v1849_v42, %v287_v48 }
  0xb4   :  { %v143_v52 = vsel %vm120_vm0, %v111_v50, 0 }
  0xb5   :  { %v1861_v53 = vand.u32 4294901760, %v143_v52  ;;  %v289_v54 = vand.u32 4294901760, %v288_v51  ;;  %v297_v55 = vand.u32 4294901760, %v1857_v49 }
  0xb7   :  { %v1865_v56 = vsub.f32 %v143_v52, %v1861_v53  ;;  %v112_v57 = vpop.trf.xlu0  ;;  %1446 = vmatmul.mubr.f32.gmra.mrb[4].mxu1 %v289_v54  ;;  %1526 = vmatprep.mubr.f32.mxu0 %v297_v55  ;;  %v298_v58 = vsub.f32 %v1857_v49, %v297_v55 }
  0xb8   :  { %v146_v59 = vsel %vm120_vm0, %v112_v57, 0 }
  0xb9   :  { %v1869_v60 = vand.u32 4294901760, %v146_v59  ;;  %v299_v61 = vand.u32 4294901760, %v298_v58  ;;  %v307_v62 = vand.u32 4294901760, %v1865_v56 }
  0xbb   :  { %v1873_v63 = vsub.f32 %v146_v59, %v1869_v60  ;;  %v113_v3 = vpop.trf.xlu0  ;;  %1448 = vmatprep.mubr.f32.mxu1 %v299_v61  ;;  %1527 = vmatmul.mubr.f32.gmra.mrb[6].mxu0 %v307_v62  ;;  %v308_v4 = vsub.f32 %v1865_v56, %v307_v62 }
  0xbc   :  { %v149_v5 = vsel %vm120_vm0, %v113_v3, 0 }
  0xbd   :  { %v1877_v6 = vand.u32 4294901760, %v149_v5  ;;  %v309_v7 = vand.u32 4294901760, %v308_v4  ;;  %v317_v10 = vand.u32 4294901760, %v1873_v63 }
  0xbf   :  { %v1881_v11 = vsub.f32 %v149_v5, %v1877_v6  ;;  %v114_v13 = vpop.trf.xlu0  ;;  %1449 = vmatmul.mubr.f32.gmra.mrb[6].mxu1 %v309_v7  ;;  %1529 = vmatprep.mubr.f32.mxu0 %v317_v10  ;;  %v318_v15 = vsub.f32 %v1873_v63, %v317_v10 }
  0xc0   :  { %v152_v16 = vsel %vm120_vm0, %v114_v13, 0 }
  0xc1   :  { %v1885_v17 = vand.u32 4294901760, %v152_v16  ;;  %v319_v19 = vand.u32 4294901760, %v318_v15  ;;  %v327_v20 = vand.u32 4294901760, %v1881_v11 }
  0xc3   :  { %v1889_v22 = vsub.f32 %v152_v16, %v1885_v17  ;;  %v115_v23 = vpop.trf.xlu0  ;;  %1451 = vmatprep.mubr.f32.mxu1 %v319_v19  ;;  %1530 = vmatmul.mubr.f32.gmra.mrb[8].mxu0 %v327_v20  ;;  %v328_v24 = vsub.f32 %v1881_v11, %v327_v20 }
  0xc4   :  { %v155_v26 = vsel %vm120_vm0, %v115_v23, 0 }
  0xc5   :  { %v1893_v27 = vand.u32 4294901760, %v155_v26  ;;  %v329_v29 = vand.u32 4294901760, %v328_v24  ;;  %v337_v30 = vand.u32 4294901760, %v1889_v22 }
  0xc7   :  { %v1897_v31 = vsub.f32 %v155_v26, %v1893_v27  ;;  %v116_v33 = vpop.trf.xlu0  ;;  %1452 = vmatmul.mubr.f32.gmra.mrb[8].mxu1 %v329_v29  ;;  %1532 = vmatprep.mubr.f32.mxu0 %v337_v30  ;;  %v338_v34 = vsub.f32 %v1889_v22, %v337_v30 }
  0xc8   :  { %v158_v36 = vsel %vm120_vm0, %v116_v33, 0 }
  0xc9   :  { %v1901_v37 = vand.u32 4294901760, %v158_v36  ;;  %v339_v38 = vand.u32 4294901760, %v338_v34  ;;  %v347_v40 = vand.u32 4294901760, %v1897_v31 }
  0xcb   :  { %v1905_v41 = vsub.f32 %v158_v36, %v1901_v37  ;;  %v117_v43 = vpop.trf.xlu0  ;;  %1454 = vmatprep.mubr.f32.mxu1 %v339_v38  ;;  %1533 = vmatmul.mubr.f32.gmra.mrb[10].mxu0 %v347_v40  ;;  %v348_v44 = vsub.f32 %v1897_v31, %v347_v40 }
  0xcc   :  { %v161_v45 = vsel %vm120_vm0, %v117_v43, 0 }
  0xcd   :  { %v1909_v47 = vand.u32 4294901760, %v161_v45  ;;  %v349_v48 = vand.u32 4294901760, %v348_v44  ;;  %v357_v50 = vand.u32 4294901760, %v1905_v41 }
  0xcf   :  { %v1913_v51 = vsub.f32 %v161_v45, %v1909_v47  ;;  %v118_v52 = vpop.trf.xlu0  ;;  %1455 = vmatmul.mubr.f32.gmra.mrb[10].mxu1 %v349_v48  ;;  %1535 = vmatprep.mubr.f32.mxu0 %v357_v50  ;;  %v358_v54 = vsub.f32 %v1905_v41, %v357_v50 }
  0xd0   :  { %v164_v55 = vsel %vm120_vm0, %v118_v52, 0 }
  0xd1   :  { %v1917_v57 = vand.u32 4294901760, %v164_v55  ;;  %v359_v58 = vand.u32 4294901760, %v358_v54  ;;  %v367_v59 = vand.u32 4294901760, %v1913_v51 }
  0xd3   :  { %v1921_v61 = vsub.f32 %v164_v55, %v1917_v57  ;;  %v119_v62 = vpop.trf.xlu0  ;;  %1457 = vmatprep.mubr.f32.mxu1 %v359_v58  ;;  %1536 = vmatmul.mubr.f32.gmra.mrb[12].mxu0 %v367_v59  ;;  %v368_v3 = vsub.f32 %v1913_v51, %v367_v59 }
  0xd4   :  { %v167_v4 = vsel %vm120_vm0, %v119_v62, 0 }
  0xd5   :  { %v1925_v5 = vand.u32 4294901760, %v167_v4  ;;  %v369_v7 = vand.u32 4294901760, %v368_v3  ;;  %v377_v10 = vand.u32 4294901760, %v1921_v61 }
  0xd7   :  { %v1929_v13 = vsub.f32 %v167_v4, %v1925_v5  ;;  %1458 = vmatmul.mubr.f32.gmra.mrb[12].mxu1 %v369_v7  ;;  %1538 = vmatprep.mubr.f32.mxu0 %v377_v10  ;;  %v378_v15 = vsub.f32 %v1921_v61, %v377_v10 }
  0xd9   :  { %v379_v16 = vand.u32 4294901760, %v378_v15  ;;  %v387_v19 = vand.u32 4294901760, %v1929_v13 }
  0xdb   :  { %1460 = vmatprep.mubr.f32.mxu1 %v379_v16  ;;  %1539 = vmatmul.mubr.f32.gmra.mrb[14].mxu0 %v387_v19  ;;  %v388_v20 = vsub.f32 %v1929_v13, %v387_v19 }
  0xdc   :  { %1543 = vmatprep.mubr.f32.mxu0 %v1805_v8 }
  0xdd   :  { %v389_v23 = vand.u32 4294901760, %v388_v20 }
  0xdf   :  { %1461 = vmatmul.mubr.f32.gmra.mrb[14].mxu1 %v389_v23  ;;  %1544 = vmatmul.mubr.f32.vlgmr.msra.gmra.mrb[0].mxu0 %v1811_v12 }
  0xe0   :  { %1465 = vmatprep.mubr.f32.mxu1 %v1805_v8  ;;  %1546 = vmatprep.mubr.f32.mxu0 %v1819_v18 }
  0xe1   :  { %1568 = vmatpush3.msra.mxu0 %v1792_v1  ;;  %v1756_v1 = vmov 0.0  }
  0xe2   :  { %62 = vst [vmem:[#allocation6] sm:$0x1] %v1756_v1 }
  0xe3   :  { %1466 = vmatmul.mubr.f32.vlgmr.msra.gmra.mrb[0].mxu1 %v1811_v12  ;;  %1547 = vmatmul.mubr.f32.gmra.mrb[2].mxu0 %v1827_v25 }
  0xe4   :  { %1490 = vmatpush3.msra.mxu1 %v1800_v2  ;;  %1468 = vmatprep.mubr.f32.mxu1 %v1819_v18  ;;  %v1293_v2 = vrot.slane %v1788_v0, 4 }
  0xe5   :  { %1549 = vmatprep.mubr.f32.mxu0 %v1836_v32 }
  0xe7   :  { %1469 = vmatmul.mubr.f32.gmra.mrb[2].mxu1 %v1827_v25  ;;  %1550 = vmatmul.mubr.f32.gmra.mrb[4].mxu0 %v1845_v39 }
  0xe8   :  { %1471 = vmatprep.mubr.f32.mxu1 %v1836_v32  ;;  %1552 = vmatprep.mubr.f32.mxu0 %v1853_v46 }
  0xeb   :  { %1472 = vmatmul.mubr.f32.gmra.mrb[4].mxu1 %v1845_v39  ;;  %1553 = vmatmul.mubr.f32.gmra.mrb[6].mxu0 %v1861_v53 }
  0xec   :  { %1474 = vmatprep.mubr.f32.mxu1 %v1853_v46  ;;  %1555 = vmatprep.mubr.f32.mxu0 %v1869_v60 }
  0xef   :  { %1475 = vmatmul.mubr.f32.gmra.mrb[6].mxu1 %v1861_v53  ;;  %1556 = vmatmul.mubr.f32.gmra.mrb[8].mxu0 %v1877_v6 }
  0xf0   :  { %1477 = vmatprep.mubr.f32.mxu1 %v1869_v60  ;;  %1558 = vmatprep.mubr.f32.mxu0 %v1885_v17 }
  0xf3   :  { %1478 = vmatmul.mubr.f32.gmra.mrb[8].mxu1 %v1877_v6  ;;  %1559 = vmatmul.mubr.f32.gmra.mrb[10].mxu0 %v1893_v27 }
  0xf4   :  { %1480 = vmatprep.mubr.f32.mxu1 %v1885_v17  ;;  %1561 = vmatprep.mubr.f32.mxu0 %v1901_v37 }
  0xf7   :  { %1481 = vmatmul.mubr.f32.gmra.mrb[10].mxu1 %v1893_v27  ;;  %1562 = vmatmul.mubr.f32.gmra.mrb[12].mxu0 %v1909_v47 }
  0xf8   :  { %1483 = vmatprep.mubr.f32.mxu1 %v1901_v37  ;;  %1564 = vmatprep.mubr.f32.mxu0 %v1917_v57 }
  0xfb   :  { %1484 = vmatmul.mubr.f32.gmra.mrb[12].mxu1 %v1909_v47  ;;  %1565 = vmatmul.mubr.f32.gmra.mrb[14].mxu0 %v1925_v5 }
  0xfc   :  { %1486 = vmatprep.mubr.f32.mxu1 %v1917_v57  ;;  %1569 = vmatprep.mubr.f32.mxu0 %v1805_v8  ;;  %v1294_v8 = vadd.f32 %v1788_v0, %v1293_v2 }
  0xff   :  { %1487 = vmatmul.mubr.f32.gmra.mrb[14].mxu1 %v1925_v5  ;;  %1570 = vmatmul.mubr.f32.vlgmr.msra.gmra.mrb[0].mxu0 %v1811_v12 }
 0x100   :  { %1491 = vmatprep.mubr.f32.mxu1 %v1808_v9  ;;  %1572 = vmatprep.mubr.f32.mxu0 %v1819_v18  ;;  %v1295_v9 = vrot.slane %v1294_v8, 2 }
 0x102   :  { %v1296_v12 = vadd.f32 %v1295_v9, %v1294_v8 }
 0x103   :  { %1492 = vmatmul.mubr.f32.vlgmr.msra.gmra.mrb[0].mxu1 %v1815_v14  ;;  %1573 = vmatmul.mubr.f32.gmra.mrb[2].mxu0 %v1827_v25 }
 0x104   :  { %1494 = vmatprep.mubr.f32.mxu1 %v1823_v21  ;;  %1575 = vmatprep.mubr.f32.mxu0 %v1836_v32  ;;  %v1297_v14 = vrot.slane %v1296_v12, 1  ;;  %v1292_v21 = vld [vmem:[#allocation6] sm:$0x1] }
 0x106   :  { %v1298_v18 = vadd.f32 %v1297_v14, %v1296_v12 }
 0x107   :  { %1495 = vmatmul.mubr.f32.gmra.mrb[2].mxu1 %v1832_v28  ;;  %1576 = vmatmul.mubr.f32.gmra.mrb[4].mxu0 %v1845_v39 }
 0x108   :  { %1497 = vmatprep.mubr.f32.mxu1 %v1841_v35  ;;  %1578 = vmatprep.mubr.f32.mxu0 %v1853_v46  ;;  %v1299_v25 = vadd.f32 %v1298_v18, %v1292_v21 }
 0x10a   :  { %1300 = vst [vmem:[#allocation6] sm:$0x1] %v1299_v25 }
 0x10b   :  { %1498 = vmatmul.mubr.f32.gmra.mrb[4].mxu1 %v1849_v42  ;;  %1579 = vmatmul.mubr.f32.gmra.mrb[6].mxu0 %v1861_v53 }
 0x10c   :  { %1500 = vmatprep.mubr.f32.mxu1 %v1857_v49  ;;  %1581 = vmatprep.mubr.f32.mxu0 %v1869_v60 }
 0x10f   :  { %1501 = vmatmul.mubr.f32.gmra.mrb[6].mxu1 %v1865_v56  ;;  %1582 = vmatmul.mubr.f32.gmra.mrb[8].mxu0 %v1877_v6 }
 0x110   :  { %1503 = vmatprep.mubr.f32.mxu1 %v1873_v63  ;;  %1584 = vmatprep.mubr.f32.mxu0 %v1885_v17 }
 0x113   :  { %1504 = vmatmul.mubr.f32.gmra.mrb[8].mxu1 %v1881_v11  ;;  %1585 = vmatmul.mubr.f32.gmra.mrb[10].mxu0 %v1893_v27 }
 0x114   :  { %1506 = vmatprep.mubr.f32.mxu1 %v1889_v22  ;;  %1587 = vmatprep.mubr.f32.mxu0 %v1901_v37 }
 0x117   :  { %1507 = vmatmul.mubr.f32.gmra.mrb[10].mxu1 %v1897_v31  ;;  %1588 = vmatmul.mubr.f32.gmra.mrb[12].mxu0 %v1909_v47 }
 0x118   :  { %1509 = vmatprep.mubr.f32.mxu1 %v1905_v41  ;;  %1590 = vmatprep.mubr.f32.mxu0 %v1917_v57 }
 0x11b   :  { %1510 = vmatmul.mubr.f32.gmra.mrb[12].mxu1 %v1913_v51  ;;  %1591 = vmatmul.mubr.f32.gmra.mrb[14].mxu0 %v1925_v5 }
 0x11c   :  { %1512 = vmatprep.mubr.f32.mxu1 %v1921_v61 }
 0x11f   :  { %1513 = vmatmul.mubr.f32.gmra.mrb[14].mxu1 %v1929_v13 }
 0x120   :  { %1714 = shalt.err (!%p1711_p12)
}
 0x121   :  { %s1715_s29 = scalar_lea.hbm %s2028_s2, 16 }
 0x122   :  { %p1716_p13 = scmp.ne.s32.totalorder %s2028_s2, %s1715_s29  ;;  %p1719_p0 = scmp.lt.u32.totalorder %s1715_s29, %s2028_s2 }
 0x124   :  { %p1721_p1 = pnand %p1719_p0, %p1716_p13 }
 0x126   :  { %1724 = shalt.err (!%p1721_p1)
}
 0x127   :  { %1322 = dma.vmem_to_hbm [thread:$0]  %s1320_s24, 16, %s2028_s2, [#allocation7]  }
 0x128   :  { %s1758_s2 = smov [#allocation5]  }
 0x129   :  { %s1306_s8 = sshll.u32 %s1758_s2, 4  ;;  %s1307_s8 = int_to_ptr.vmem [resolvable:$true] %s1306_s8 }
 0x12a   :  { %s1725_s9 = scalar_lea.vmem %s1307_s8, 2048  ;;  %p1730_p3 = scmp.lt.s32.totalorder %s1307_s8, %s1307_s8 }
 0x12b   :  { %p1726_p2 = scmp.ne.s32.totalorder %s1307_s8, %s1725_s9  ;;  %p1731_p4 = scmp.lt.s32.totalorder %s1725_s9, %s1725_s9 }
 0x12d   :  { %p1732_p5 = por %p1731_p4, %p1730_p3 }
 0x12f   :  { %p1733_p6 = pnand %p1732_p5, %p1726_p2 }
 0x1d2   :  { %v1571_v0 = vpop.f32.mrb[0].mxu0 }
 0x1d3   :  { %v1166_v28 = vpop.f32.mrb[1].mxu0 }
 0x1d6   :  { %v1493_v32 = vpop.f32.mrb[0].mxu1  ;;  %v1574_v35 = vpop.f32.mrb[2].mxu0 }
 0x1d7   :  { %v1593_v39 = vadd.f32 %v1571_v0, %v1493_v32  ;;  %v631_v42 = vpop.f32.mrb[1].mxu1  ;;  %v1178_v46 = vpop.f32.mrb[3].mxu0 }
 0x1d8   :  { %v1594_v49 = vadd.f32 %v1166_v28, %v631_v42 }
 0x1d9   :  { %1277 = vst [vmem:[#allocation5 + $0x8] sm:$0xff] %v1593_v39 }
 0x1da   :  { %v1496_v53 = vpop.f32.mrb[2].mxu1  ;;  %v1577_v56 = vpop.f32.mrb[4].mxu0  ;;  %1276 = vst [vmem:[#allocation5] sm:$0xff] %v1594_v49 }
 0x1db   :  { %v1595_v60 = vadd.f32 %v1574_v35, %v1496_v53  ;;  %v645_v63 = vpop.f32.mrb[3].mxu1  ;;  %v1190_v6 = vpop.f32.mrb[5].mxu0 }
 0x1dc   :  { %v1596_v11 = vadd.f32 %v1178_v46, %v645_v63 }
 0x1dd   :  { %1279 = vst [vmem:[#allocation5 + $0x18] sm:$0xff] %v1595_v60 }
 0x1de   :  { %v1499_v17 = vpop.f32.mrb[4].mxu1  ;;  %v1580_v22 = vpop.f32.mrb[6].mxu0  ;;  %1278 = vst [vmem:[#allocation5 + $0x10] sm:$0xff] %v1596_v11 }
 0x1df   :  { %v1597_v24 = vadd.f32 %v1577_v56, %v1499_v17  ;;  %v659_v26 = vpop.f32.mrb[5].mxu1  ;;  %v1202_v27 = vpop.f32.mrb[7].mxu0 }
 0x1e0   :  { %v1598_v29 = vadd.f32 %v1190_v6, %v659_v26 }
 0x1e1   :  { %1281 = vst [vmem:[#allocation5 + $0x28] sm:$0xff] %v1597_v24 }
 0x1e2   :  { %v1502_v30 = vpop.f32.mrb[6].mxu1  ;;  %v1583_v31 = vpop.f32.mrb[8].mxu0  ;;  %1280 = vst [vmem:[#allocation5 + $0x20] sm:$0xff] %v1598_v29 }
 0x1e3   :  { %v1599_v33 = vadd.f32 %v1580_v22, %v1502_v30  ;;  %v673_v34 = vpop.f32.mrb[7].mxu1  ;;  %v1214_v36 = vpop.f32.mrb[9].mxu0 }
 0x1e4   :  { %v1600_v37 = vadd.f32 %v1202_v27, %v673_v34 }
 0x1e5   :  { %1283 = vst [vmem:[#allocation5 + $0x38] sm:$0xff] %v1599_v33 }
 0x1e6   :  { %v1505_v38 = vpop.f32.mrb[8].mxu1  ;;  %v1586_v40 = vpop.f32.mrb[10].mxu0  ;;  %1282 = vst [vmem:[#allocation5 + $0x30] sm:$0xff] %v1600_v37 }
 0x1e7   :  { %v1601_v41 = vadd.f32 %v1583_v31, %v1505_v38  ;;  %v687_v43 = vpop.f32.mrb[9].mxu1  ;;  %v1226_v44 = vpop.f32.mrb[11].mxu0 }
 0x1e8   :  { %v1602_v45 = vadd.f32 %v1214_v36, %v687_v43 }
 0x1e9   :  { %1285 = vst [vmem:[#allocation5 + $0x48] sm:$0xff] %v1601_v41 }
 0x1ea   :  { %v1508_v47 = vpop.f32.mrb[10].mxu1  ;;  %v1589_v48 = vpop.f32.mrb[12].mxu0  ;;  %1284 = vst [vmem:[#allocation5 + $0x40] sm:$0xff] %v1602_v45 }
 0x1eb   :  { %v1603_v50 = vadd.f32 %v1586_v40, %v1508_v47  ;;  %v701_v51 = vpop.f32.mrb[11].mxu1  ;;  %v1238_v52 = vpop.f32.mrb[13].mxu0 }
 0x1ec   :  { %v1604_v54 = vadd.f32 %v1226_v44, %v701_v51 }
 0x1ed   :  { %1287 = vst [vmem:[#allocation5 + $0x58] sm:$0xff] %v1603_v50 }
 0x1ee   :  { %v1511_v55 = vpop.f32.mrb[12].mxu1  ;;  %v1592_v57 = vpop.f32.mrb[14].mxu0  ;;  %1286 = vst [vmem:[#allocation5 + $0x50] sm:$0xff] %v1604_v54 }
 0x1ef   :  { %v1605_v58 = vadd.f32 %v1589_v48, %v1511_v55  ;;  %v715_v59 = vpop.f32.mrb[13].mxu1  ;;  %v1250_v61 = vpop.f32.mrb[15].mxu0 }
 0x1f0   :  { %v1606_v62 = vadd.f32 %v1238_v52, %v715_v59 }
 0x1f1   :  { %1289 = vst [vmem:[#allocation5 + $0x68] sm:$0xff] %v1605_v58 }
 0x1f2   :  { %v1514_v3 = vpop.f32.mrb[14].mxu1  ;;  %1288 = vst [vmem:[#allocation5 + $0x60] sm:$0xff] %v1606_v62 }
 0x1f3   :  { %v1607_v4 = vadd.f32 %v1592_v57, %v1514_v3  ;;  %v729_v5 = vpop.f32.mrb[15].mxu1 }
 0x1f4   :  { %v1608_v7 = vadd.f32 %v1250_v61, %v729_v5 }
 0x1f5   :  { %1291 = vst [vmem:[#allocation5 + $0x78] sm:$0xff] %v1607_v4 }
 0x1f6   :  { %1290 = vst [vmem:[#allocation5 + $0x70] sm:$0xff] %v1608_v7 }
 0x1f7   :  { %1736 = shalt.err (!%p1733_p6)
}
 0x1f8   :  { %s1737_s12 = scalar_lea.hbm %s2027_s1, 2048 }
 0x1f9   :  { %p1738_p7 = scmp.ne.s32.totalorder %s2027_s1, %s1737_s12  ;;  %p1741_p8 = scmp.lt.u32.totalorder %s1737_s12, %s2027_s1 }
 0x1fb   :  { %p1743_p9 = pnand %p1741_p8, %p1738_p7 }
 0x1fd   :  { %1746 = shalt.err (!%p1743_p9)
}
 0x1fe   :  { %s1759_s17 = smov 128   ;;  %s1760_s18 = smov 8  }
 0x1ff   :  { %1312 = dma.vmem_to_hbm [thread:$0]  %s1307_s8, 2048, %s2027_s1, [#allocation4], %s1759_s17, %s1759_s17, %s1760_s18  }
 0x200   :  { %1749 = dma.done.wait [#allocation4], 2048  }
 0x201   :  { %1750 = vsyncadd [#allocation4], 4294965248 }
 0x202   :  { %1751 = dma.done.wait [#allocation7], 16  }
 0x203   :  { %1752 = vsyncadd [#allocation7], 4294967280 }
 0x204   :  { %1329 = vsyncpa [#allocation3], 1 }
 0x205   :  { %1330 = vsyncpa [#allocation4], 1 }
 0x206   :  { %1331 = vsyncpa [#allocation7], 1 }

</bundles_post_ra>
